<compile_context>
chip_gen: v7x
topology: tpu7x:2x2x1
jax: 0.10.0
libtpu: 0.0.40
codegen_flags: <defaults>
</compile_context>

<pallas_src>
import jax
import jax.numpy as jnp
from jax import lax
from jax.experimental import pallas as pl
from jax.experimental.pallas import tpu as pltpu

_LANES = 128


def _cdiv(a, b):
    return -(-a // b)


def _round_up(x, m):
    return ((x + m - 1) // m) * m


def _generation_defaults():
    """Returns (per-input-per-buffer tile bytes, core splits, vmem limit, vmem cap)."""
    kind = ""
    try:
        kind = jax.devices()[0].device_kind.lower()
    except Exception:
        pass
    if "v7" in kind:                    # 2 TC/chip, 64 MiB VMEM, ~3.2 TB/s HBM
        return 6 << 20, 2, 40 << 20, 56 << 20
    if "v6" in kind:                    # 1 TC, 128 MiB VMEM, ~1.4 TB/s HBM
        return 4 << 20, 1, 40 << 20, 96 << 20
    if "v5p" in kind or "v4" in kind:   # megacore chips: 2 TCs
        return 4 << 20, 2, 40 << 20, 96 << 20
    if "v5" in kind:                    # v5e: 1 TC, 16 MiB default scoped VMEM
        return 2 << 20, 1, 24 << 20, 96 << 20
    return 2 << 20, 1, 24 << 20, 96 << 20


def _sublane_multiple(*dtypes):
    # min tile second-minor: 8 for 4-byte, 16 for 2-byte, 32 for 1-byte dtypes.
    return max(max(8, 32 // jnp.dtype(d).itemsize) for d in dtypes)


def _make_kernel(*, steps, tiles, rows, tile_rows, fast_path):
    def kernel(pred_ref, y_ref, out_ref, acc_ref):
        c = pl.program_id(0)
        k = pl.program_id(1)

        @pl.when(k == 0)
        def _init():
            acc_ref[...] = jnp.zeros_like(acc_ref)

        # Cast in-register (inputs may be bf16); diff/square is pure VPU work.
        d = pred_ref[...].astype(jnp.float32) - y_ref[...].astype(jnp.float32)
        sq = d * d

        if not fast_path:
            # Mask rows past the true row count: covers the partial final tile
            # (DMA-clipped -> unspecified memory beyond `rows`) and any dead
            # (clamped) blocks on the last core split.  select, not multiply,
            # so garbage NaNs can never leak into the sum.
            t = c * steps + k                        # unclamped global tile id
            nvalid = jnp.clip(rows - t * tile_rows, 0, tile_rows)
            row_idx = lax.broadcasted_iota(jnp.int32, (tile_rows, _LANES), 0)
            sq = jnp.where(row_idx < nvalid, sq, 0.0)

        # Fold (tile_rows, 128) -> (8, 128): layout-preserving reshape + adds
        # over the leading axis, accumulated into a single-vreg f32 scratch.
        acc_ref[...] += jnp.sum(sq.reshape(tile_rows // 8, 8, _LANES), axis=0)

        @pl.when(k == pl.num_programs(1) - 1)
        def _finalize():
            # One cross-sublane reduce per core, epilogue only.
            out_ref[...] = jnp.sum(acc_ref[...], axis=0).reshape(1, 1, _LANES)

    return kernel


def sh_mse_loss(predictions, y, num_graphs, *, tile_rows=None,
                num_core_splits=None, use_pallas=None, core_parallel=False):
    """MSE(predictions.view(N), y.view(N)) with reduction='mean'."""
    n = int(num_graphs)
    pred = predictions.reshape(n)
    targ = y.reshape(n)

    rows = n // _LANES
    tail = n - rows * _LANES

    # Tiny-N fallback: a three-op fused XLA reduction beats a custom-call
    # launch.  Also taken when there is not even one full 128-lane row.
    if use_pallas is None:
        use_pallas = n >= 65536
    if (not use_pallas) or rows == 0:
        d = pred.astype(jnp.float32) - targ.astype(jnp.float32)
        return jnp.mean(d * d)

    p_isz = jnp.dtype(pred.dtype).itemsize
    t_isz = jnp.dtype(targ.dtype).itemsize
    mult = _sublane_multiple(pred.dtype, targ.dtype)

    tile_budget, splits_default, vmem_default, vmem_cap = _generation_defaults()

    # ---- tile / split sizing (review: derive tile from steps, round to the
    # dtype's sublane multiple, no padding of the data itself) ----
    if tile_rows is None:
        tile_rows = max(mult, (tile_budget // (_LANES * max(p_isz, t_isz)))
                        // mult * mult)
    else:
        tile_rows = max(mult, _round_up(int(tile_rows), mult))

    splits = splits_default if num_core_splits is None else int(num_core_splits)
    tiles0 = _cdiv(rows, tile_rows)
    splits = max(1, min(splits, tiles0))
    steps = _cdiv(tiles0, splits)
    tile_rows = min(tile_rows, _round_up(_cdiv(rows, splits * steps), mult))
    tiles = _cdiv(rows, tile_rows)            # real tiles over the data
    steps = _cdiv(tiles, splits)              # per-core steps (coverage >= tiles)

    fast_path = (rows == splits * steps * tile_rows)   # no masking needed

    # ---- operand views: zero-copy when 128 | n, prefix slice otherwise ----
    n_bulk = rows * _LANES
    if tail:
        pred2 = pred[:n_bulk].reshape(rows, _LANES)
        targ2 = targ[:n_bulk].reshape(rows, _LANES)
    else:
        pred2 = pred.reshape(rows, _LANES)    # free bitcast, no copy
        targ2 = targ.reshape(rows, _LANES)

    # Clamp the block index so a dead block on the last split never DMAs out
    # of bounds (its contribution is masked to zero in the kernel).
    if splits * steps == tiles:
        in_map = lambda c, k: (c * steps + k, 0)
    else:
        in_map = lambda c, k: (jnp.minimum(c * steps + k, tiles - 1), 0)

    tile_bytes = tile_rows * _LANES * (p_isz + t_isz)
    needed = 2 * tile_bytes + (8 * _LANES * 4) + (splits * _LANES * 4) + (1 << 20)
    vmem_limit = int(min(max(vmem_default, needed + (4 << 20)), vmem_cap))

    if core_parallel:
        dim_sem = (pltpu.CORE_PARALLEL, pltpu.ARBITRARY)
    else:
        dim_sem = ("parallel", "arbitrary")

    kernel = _make_kernel(steps=steps, tiles=tiles, rows=rows,
                          tile_rows=tile_rows, fast_path=fast_path)

    partials = pl.pallas_call(
        kernel,
        out_shape=jax.ShapeDtypeStruct((splits, 1, _LANES), jnp.float32),
        grid=(splits, steps),
        in_specs=[
            pl.BlockSpec((tile_rows, _LANES), in_map),
            pl.BlockSpec((tile_rows, _LANES), in_map),
        ],
        out_specs=pl.BlockSpec((1, 1, _LANES), lambda c, k: (c, 0, 0)),
        scratch_shapes=[pltpu.VMEM((8, _LANES), jnp.float32)],
        compiler_params=pltpu.CompilerParams(
            dimension_semantics=dim_sem,
            vmem_limit_bytes=vmem_limit),
        cost_estimate=pl.CostEstimate(
            flops=3 * rows * _LANES,
            transcendentals=0,
            bytes_accessed=rows * _LANES * (p_isz + t_isz) + splits * _LANES * 4),
    )(pred2, targ2)

    total = jnp.sum(partials)
    if tail:
        pt = pred[n_bulk:].astype(jnp.float32)
        tt = targ[n_bulk:].astype(jnp.float32)
        total = total + jnp.sum((pt - tt) ** 2)

    # Divide by the TRUE element count (masking guarantees nothing spurious
    # entered the sum).
    return total / n


if __name__ == "__main__":
    key = jax.random.PRNGKey(0)
    k1, k2, k3, k4 = jax.random.split(key, 4)

    def ref_loss(p, t, n):
        return jnp.mean((p.reshape(n).astype(jnp.float32)
                         - t.reshape(n).astype(jnp.float32)) ** 2)

    # 1) Typical tiny GNN batch: predictions (N,1), targets (N,), f32 (auto
    #    path -> fused jnp reduction; semantics identical).
    n1 = 8
    p1 = jax.random.normal(k1, (n1, 1), dtype=jnp.float32)
    t1 = jax.random.normal(k2, (n1,), dtype=jnp.float32)
    l1 = jax.block_until_ready(sh_mse_loss(p1, t1, n1))
    r1 = ref_loss(p1, t1, n1)
    assert jnp.allclose(l1, r1, rtol=1e-5, atol=1e-6), (l1, r1)

    # 2) Non-128-aligned N, forced Pallas path with tiny tiles and a 2-way
    #    core split: exercises multi-step accumulation, the clamped dead
    #    block, the masked partial final tile, and the <128-element lane tail
    #    folded in by the wrapper.
    n2 = 3000
    p2 = jax.random.normal(k3, (n2, 1), dtype=jnp.float32)
    t2 = jax.random.normal(k4, (n2,), dtype=jnp.float32)
    l2 = jax.block_until_ready(
        sh_mse_loss(p2, t2, n2, tile_rows=8, num_core_splits=2, use_pallas=True))
    r2 = ref_loss(p2, t2, n2)
    assert jnp.allclose(l2, r2, rtol=1e-5, atol=1e-6), (l2, r2)

    # 3) 128-aligned bf16 inputs, default (per-generation) config: fully
    #    zero-copy operands, fast unmasked kernel variant, bf16 stays bf16
    #    across the pallas_call and is upcast in-register.
    n3 = 4096
    p3 = jax.random.normal(k3, (n3,), dtype=jnp.float32).astype(jnp.bfloat16)
    t3 = jax.random.normal(k4, (n3,), dtype=jnp.float32).astype(jnp.bfloat16)
    l3 = jax.block_until_ready(sh_mse_loss(p3, t3, n3, use_pallas=True))
    r3 = ref_loss(p3, t3, n3)
    assert jnp.allclose(l3, r3, rtol=1e-3, atol=1e-5), (l3, r3)

    # 4) Non-aligned bf16 with default tiles: tile rows are rounded to the
    #    bf16 (16,128) min-tile multiple; masked partial tile + jnp lane tail.
    p4 = p2.astype(jnp.bfloat16)
    t4 = t2.astype(jnp.bfloat16)
    l4 = jax.block_until_ready(sh_mse_loss(p4, t4, n2, use_pallas=True))
    r4 = ref_loss(p4, t4, n2)
    assert jnp.allclose(l4, r4, rtol=1e-3, atol=1e-5), (l4, r4)

    print("KERNEL_OK")
</pallas_src>

<mosaic_0001>
module attributes {stable_mosaic.version = 11 : i64} {
  func.func @kernel(%arg0: i32, %arg1: i32, %arg2: memref<8x128xf32, #tpu.memory_space<vmem>>, %arg3: memref<8x128xf32, #tpu.memory_space<vmem>>, %arg4: memref<1x1x128xf32, #tpu.memory_space<vmem>>, %arg5: memref<8x128xf32, #tpu.memory_space<vmem>>) attributes {dimension_semantics = [#tpu.dimension_semantics<parallel>, #tpu.dimension_semantics<arbitrary>], iteration_bounds = array<i64: 2, 2>, scalar_prefetch = 0 : i64, scratch_operands = 1 : i64, tpu.core_type = #tpu.core_type<tc>, window_params = [{transform_indices = @transform_0, window_bounds = array<i64: 8, 128>}, {transform_indices = @transform_1, window_bounds = array<i64: 8, 128>}, {transform_indices = @transform_2, window_bounds = array<i64: 1, 1, 128>}]} {
    %c0_i32 = arith.constant 0 : i32
    %0 = arith.cmpi eq, %arg1, %c0_i32 : i32
    %1 = arith.extui %0 : i1 to i32
    %c0_i32_0 = arith.constant 0 : i32
    %2 = arith.cmpi ne, %1, %c0_i32_0 : i32
    scf.if %2 {
      %cst_12 = arith.constant 0.000000e+00 : f32
      %26 = vector.broadcast %cst_12 : f32 to vector<8x128xf32>
      %c0_13 = arith.constant 0 : index
      %c0_14 = arith.constant 0 : index
      %27 = vector.load %arg5[%c0_13, %c0_14] : memref<8x128xf32, #tpu.memory_space<vmem>>, vector<8x128xf32>
      tpu.vector_store %arg5[%c0_13, %c0_14], %26 {strides = array<i32>} : memref<8x128xf32, #tpu.memory_space<vmem>>, vector<8x128xf32>,
    } else {
    }
    %c0 = arith.constant 0 : index
    %c0_1 = arith.constant 0 : index
    %3 = vector.load %arg2[%c0, %c0_1] : memref<8x128xf32, #tpu.memory_space<vmem>>, vector<8x128xf32>
    %c0_2 = arith.constant 0 : index
    %c0_3 = arith.constant 0 : index
    %4 = vector.load %arg3[%c0_2, %c0_3] : memref<8x128xf32, #tpu.memory_space<vmem>>, vector<8x128xf32>
    %5 = arith.subf %3, %4 : vector<8x128xf32>
    %6 = arith.mulf %5, %5 : vector<8x128xf32>
    %c2_i32 = arith.constant 2 : i32
    %7 = arith.muli %arg0, %c2_i32 : i32
    %8 = arith.addi %7, %arg1 : i32
    %c8_i32 = arith.constant 8 : i32
    %9 = arith.muli %8, %c8_i32 : i32
    %c23_i32 = arith.constant 23 : i32
    %10 = arith.subi %c23_i32, %9 : i32
    %c0_i32_4 = arith.constant 0 : i32
    %c8_i32_5 = arith.constant 8 : i32
    %11 = arith.maxsi %c0_i32_4, %10 : i32
    %12 = arith.minsi %c8_i32_5, %11 : i32
    %13 = tpu.iota {dimensions = array<i32: 0>} : vector<8x128xi32>
    %14 = vector.broadcast %12 : i32 to vector<8x128xi32>
    %15 = arith.cmpi slt, %13, %14 : vector<8x128xi32>
    %cst = arith.constant 0.000000e+00 : f32
    %16 = vector.broadcast %cst : f32 to vector<8x128xf32>
    %17 = arith.select %15, %6, %16 : vector<8x128xi1>, vector<8x128xf32>
    %c0_6 = arith.constant 0 : index
    %c0_7 = arith.constant 0 : index
    %18 = vector.load %arg5[%c0_6, %c0_7] : memref<8x128xf32, #tpu.memory_space<vmem>>, vector<8x128xf32>
    %19 = vector.shape_cast %17 : vector<8x128xf32> to vector<1x8x128xf32>
    %cst_8 = arith.constant dense<0.000000e+00> : vector<8x128xf32>
    %20 = vector.multi_reduction <add>, %19, %cst_8 [0] : vector<1x8x128xf32> to vector<8x128xf32>
    %21 = arith.addf %18, %20 : vector<8x128xf32>
    %c0_9 = arith.constant 0 : index
    %c0_10 = arith.constant 0 : index
    %22 = vector.load %arg5[%c0_9, %c0_10] : memref<8x128xf32, #tpu.memory_space<vmem>>, vector<8x128xf32>
    tpu.vector_store %arg5[%c0_9, %c0_10], %21 {strides = array<i32>} : memref<8x128xf32, #tpu.memory_space<vmem>>, vector<8x128xf32>,
    %c1_i32 = arith.constant 1 : i32
    %23 = arith.cmpi eq, %arg1, %c1_i32 : i32
    %24 = arith.extui %23 : i1 to i32
    %c0_i32_11 = arith.constant 0 : i32
    %25 = arith.cmpi ne, %24, %c0_i32_11 : i32
    scf.if %25 {
      %c0_12 = arith.constant 0 : index
      %c0_13 = arith.constant 0 : index
      %26 = vector.load %arg5[%c0_12, %c0_13] : memref<8x128xf32, #tpu.memory_space<vmem>>, vector<8x128xf32>
      %cst_14 = arith.constant dense<0.000000e+00> : vector<128xf32>
      %27 = vector.multi_reduction <add>, %26, %cst_14 [0] : vector<8x128xf32> to vector<128xf32>
      %28 = vector.shape_cast %27 : vector<128xf32> to vector<1x1x128xf32>
      %c0_15 = arith.constant 0 : index
      %c0_16 = arith.constant 0 : index
      %c0_17 = arith.constant 0 : index
      %29 = vector.load %arg4[%c0_15, %c0_16, %c0_17] : memref<1x1x128xf32, #tpu.memory_space<vmem>>, vector<1x1x128xf32>
      tpu.vector_store %arg4[%c0_15, %c0_16, %c0_17], %28 {strides = array<i32>} : memref<1x1x128xf32, #tpu.memory_space<vmem>>, vector<1x1x128xf32>,
    } else {
    }
    return
  }
  func.func @transform_0(%arg0: i32, %arg1: i32) -> (i32, i32) {
    %c2_i32 = arith.constant 2 : i32
    %0 = arith.muli %arg0, %c2_i32 : i32
    %1 = arith.addi %0, %arg1 : i32
    %c2_i32_0 = arith.constant 2 : i32
    %2 = arith.minsi %1, %c2_i32_0 : i32
    %c0_i32 = arith.constant 0 : i32
    %c0_i32_1 = arith.constant 0 : i32
    return %2, %c0_i32 : i32, i32
  }
  func.func @transform_1(%arg0: i32, %arg1: i32) -> (i32, i32) {
    %c2_i32 = arith.constant 2 : i32
    %0 = arith.muli %arg0, %c2_i32 : i32
    %1 = arith.addi %0, %arg1 : i32
    %c2_i32_0 = arith.constant 2 : i32
    %2 = arith.minsi %1, %c2_i32_0 : i32
    %c0_i32 = arith.constant 0 : i32
    %c0_i32_1 = arith.constant 0 : i32
    return %2, %c0_i32 : i32, i32
  }
  func.func @transform_2(%arg0: i32, %arg1: i32) -> (i32, i32, i32) {
    %c0_i32 = arith.constant 0 : i32
    %c0_i32_0 = arith.constant 0 : i32
    %c0_i32_1 = arith.constant 0 : i32
    return %arg0, %c0_i32, %c0_i32_0 : i32, i32, i32
  }
}

</mosaic_0001>

<bundles_post_ra>
// kernel: tpu_custom_call.1
= control target key start
LH: loop header
LB: loop body
LE: loop exit
PB: predicated region body
PF: predicated region fallthrough
CT: control target
= control target key end

     0   :  { %s1020_s0 = inlined_call_operand.hbm [shape: f32[23,128], index: 0, kind: input, shape index: {}]   ;;  %s1021_s1 = inlined_call_operand.hbm [shape: f32[23,128], index: 1, kind: input, shape index: {}]   ;;  %s1022_s2 = inlined_call_operand.hbm [shape: f32[2,1,128], index: 2, kind: output, shape index: {}]  }
   0x1   :  { %1029 = sst [smem:[#allocation14_spill]] %s1020_s0 }
   0x2   :  { %7 = vsyncpa [#allocation4], 0 }
   0x3   :  { %9 = vsyncpa [#allocation4 + $0x1], 0 }
   0x4   :  { %10 = vsyncpa [#allocation7], 0 }
   0x5   :  { %12 = vsyncpa [#allocation7 + $0x1], 0 }
   0x6   :  { %13 = vsyncpa [#allocation5], 0 }
   0x7   :  { %15 = vsyncpa [#allocation5 + $0x1], 0  ;;  %s736_s9 = smov 0   ;;  %s738_s10 = smov 0  }
   0x8   :  { %s740_s11 = smov 0   ;;  %s742_s12 = smov 0  }
   0x9   :  { %s744_s13 = smov 0   ;;  %s746_s14 = smov 0  }
   0xa   :  { %s748_s15 = smov 0   ;;  %s750_s16 = smov 0  }
   0xb   :  { %s752_s17 = smov 0   ;;  %s754_s18 = smov 0  }
   0xc   :  { %s756_s19 = smov 0  }
   0xd LB: > { %s390_s20 = sadd.s32 4294967295, %s715_s19   ;;  %s391_s21 = sadd.s32 4294967294, %s715_s19   ;;  %s715_s19 = sphi %s756_s19, %s21_s19   ;;  %s711_s18 = sphi %s754_s18, %s1058_s18   ;;  %s707_s17 = sphi %s752_s17, %s1057_s17   ;;  %s703_s16 = sphi %s750_s16, %s1056_s16   ;;  %s699_s15 = sphi %s748_s15, %s1055_s15   ;;  %s695_s14 = sphi %s746_s14, %s1054_s14   ;;  %s691_s13 = sphi %s744_s13, %s1053_s13   ;;  %s687_s12 = sphi %s742_s12, %s1052_s12   ;;  %s683_s11 = sphi %s740_s11, %s1051_s11   ;;  %s679_s10 = sphi %s738_s10, %s1050_s10   ;;  %s675_s9 = sphi %s736_s9, %s1049_s9  }
   0xe   : > { %s30_s22 = sadd.s32 1, %s707_s17  ;;  %s33_s23 = sadd.s32 1, %s711_s18 }
   0xf   : > { %p31_p0 = scmp.ge.s32.totalorder %s30_s22, 2  ;;  %s392_s24 = sshll.u32 %s711_s18, 1 }
  0x10   : > { %s38_s25 = sadd.s32 %s707_s17, %s392_s24  ;;  %s48_s26 = sadd.s32 1, %s695_s14 }
  0x11   : > { %s1060_s22 = smov (%p31_p0, %s30_s22), 0  ;;  %s1062_s23 = smov (!%p31_p0, %s33_s23), %s711_s18 }
  0x12   : > { %1030 = sst [smem:[#allocation12_spill]] %s1060_s22  ;;  %p39_p1 = scmp.lt.s32.totalorder %s38_s25, 2 }
  0x13   : > { %p55_p2 = scmp.ne.s32.totalorder %s695_s14, %s691_s13  ;;  %p35_p3 = scmp.ge.s32.totalorder %s1062_s23, 2 }
  0x14   : > { %p56_p4 = scmp.eq.s32.totalorder %s715_s19, 0  ;;  %s1064_s25 = smov (!%p39_p1, %s38_s25), 2 }
  0x15   : > { %s1066_s23 = smov (%p35_p3, %s1062_s23), 0  ;;  %p61_p6 = scmp.ne.s32.totalorder %s691_s13, %s687_s12 }
  0x16   : > { %1031 = sst [smem:[#allocation13_spill]] %s1066_s23  ;;  %p808_p5 = por %p56_p4, %p55_p2 }
  0x17   : > { %s393_s28 = sshll.u32 %s1066_s23, 1  ;;  %p62_p7 = scmp.eq.s32.totalorder %s390_s20, 0 }
  0x18   : > { %s42_s29 = sadd.s32 %s393_s28, %s1060_s22  ;;  %s105_s30 = ssub.s32 %s711_s18, %s1066_s23 }
  0x19   : > { %p43_p8 = scmp.lt.s32.totalorder %s42_s29, 2  ;;  %p820_p9 = por %p62_p7, %p61_p6 }
  0x1a   : > { %p106_p10 = scmp.eq.s32.totalorder %s105_s30, 0  ;;  %s108_s4 = sadd.s32 1, %s683_s11 }
  0x1b   : > { %s1033_s3 = scalar_select %p820_p9, 1, 0 }
  0x1c   : > { %s1068_s29 = smov (!%p43_p8, %s42_s29), 2  ;;  %p118_p11 = scmp.ne.s32.totalorder %s683_s11, %s679_s10 }
  0x1d   : > { %s826_s5 = scalar_select %p106_p10, %s683_s11, %s108_s4  }
  0x1e   : > { %s45_s6 = ssub.s32 %s1064_s25, %s1068_s29  ;;  %p119_p13 = scmp.eq.s32.totalorder %s390_s20, 3 }
  0x1f   : > { %p46_p12 = scmp.eq.s32.totalorder %s45_s6, 0  ;;  %p124_p0 = scmp.ne.s32.totalorder %s679_s10, %s675_s9 }
  0x20   : > { %p125_p1 = scmp.eq.s32.totalorder %s391_s21, 3  ;;  %p840_p2 = por %p119_p13, %p118_p11 }
  0x21   : > { %s838_s7 = scalar_select %p46_p12, %s695_s14, %s48_s26  }
  0x22   : > { %s1034_s8 = scalar_select %p840_p2, 1, 0 }
  0x23   : > { %p844_p3 = por %p125_p1, %p124_p0  ;;  %p438_p4 = scmp.lt.s32.totalorder %s715_s19, 4 }
  0x24   : > { %s850_s24 = sand.u32 1, %s695_s14   ;;  %s1024_s20 = sshll.u32 %s1064_s25, 7 }
  0x25   : > { %s1035_s12 = scalar_select %p844_p3, 1, 0 }
  0x26   : > { %s1023_s28 = sshll.u32 %s850_s24, 3  ;;  %s1036_s0 = sld [smem:[#allocation14_spill]] }
  0x27   : > { %s149_s30 = scalar_lea.vmem [#allocation3], %s1023_s28  ;;  %p865_p6 = pnand %p438_p4, %p808_p5 }
  0x28   : > { %s160_s4 = sshll.u32 %s149_s30, 4  ;;  %s146_s21 = scalar_lea.sflag [#allocation4], %s850_s24  ;;  %s869_s4 = int_to_ptr.vmem [resolvable:$true] %s160_s4 }
  0x29   : > { %p531_p11 = pneg %p865_p6 }
  0x2c   : > { %s859_s29 = scalar_lea.hbm %s1036_s0, %s1024_s20  ;;  %s534_s28 = scalar_lea.hbm %s1036_s0, 384 }
  0x2d   : > { %s529_s26 = scalar_lea.hbm %s859_s29, 128  ;;  %p535_p5 = scmp.lt.u32.totalorder %s859_s29, %s1036_s0 }
  0x2e   : > { %p530_p10 = scmp.ne.s32.totalorder %s859_s29, %s529_s26  ;;  %p536_p0 = scmp.lt.u32.totalorder %s534_s28, %s529_s26 }
  0x2f   : > { %p538_p4 = scmp.lt.u32.totalorder %s529_s26, %s859_s29 }
  0x30   : > { %p532_p12 = pnand %p531_p11, %p530_p10  ;;  %p537_p1 = por %p536_p0, %p535_p5 }
  0x32   : > { %p533_p13 = pneg %p532_p12  ;;  %p539_p7 = por %p538_p4, %p537_p1 }
  0x34   : > { %p540_p8 = pnand %p539_p7, %p533_p13 }
  0x36   : > { %543 = shalt.err (!%p540_p8)
}
  0x37   : > { %s544_s22 = scalar_lea.vmem %s869_s4, 128  ;;  %s717_s27 = smov [#allocation3]  }
  0x38   : > { %p545_p10 = scmp.ne.s32.totalorder %s869_s4, %s544_s22  ;;  %s549_s30 = sshll.u32 %s717_s27, 4  ;;  %s550_s30 = int_to_ptr.vmem [resolvable:$false] %s549_s30 }
  0x39   : > { %s551_s23 = scalar_lea.vmem %s550_s30, 256  ;;  %p552_p2 = scmp.lt.s32.totalorder %s869_s4, %s550_s30 }
  0x3a   : > { %p547_p12 = pnand %p545_p10, %p531_p11  ;;  %p553_p5 = scmp.lt.s32.totalorder %s551_s23, %s544_s22 }
  0x3c   : > { %p548_p3 = pneg %p547_p12  ;;  %p554_p0 = por %p553_p5, %p552_p2 }
  0x3e   : > { %p555_p1 = pnand %p554_p0, %p548_p3 }
  0x40   : > { %558 = shalt.err (!%p555_p1)
}
  0x41   : > { %430 = dma.hbm_to_vmem [thread:$0]  (!%p865_p6), %s859_s29, 128, %s869_s4, %s146_s21  }
  0x42   : > { %p1038_p7 = scmp.lt.s32.totalorder %s715_s19, 5  ;;  %p1039_p8 = scmp.ge.s32.totalorder %s715_s19, 1 }
  0x43   : > { %s1041_s22 = sshll.u32 %s1064_s25, 7  ;;  %s1042_s30 = sshll.u32 %s850_s24, 3 }
  0x44   : > { %p903_p13 = pnand %p1039_p8, %p1038_p7  ;;  %s912_s27 = scalar_lea.hbm %s1021_s1, %s1041_s22 }
  0x45   : > { %s171_s23 = scalar_lea.vmem [#allocation6], %s1042_s30  ;;  %s168_s29 = scalar_lea.sflag [#allocation7], %s850_s24 }
  0x46   : > { %s1040_s20 = scalar_select %p903_p13, 1, 0 }
  0x47   : > { %s182_s0 = sshll.u32 %s171_s23, 4  ;;  %s559_s4 = scalar_lea.hbm %s912_s27, 128  ;;  %s183_s0 = int_to_ptr.vmem [resolvable:$true] %s182_s0 }
  0x48   : > { %p560_p2 = scmp.ne.s32.totalorder %s912_s27, %s559_s4  ;;  %s564_s22 = scalar_lea.hbm %s1021_s1, 384 }
  0x49   : > { %p565_p10 = scmp.lt.u32.totalorder %s912_s27, %s1021_s1  ;;  %p566_p12 = scmp.lt.u32.totalorder %s564_s22, %s559_s4 }
  0x4a   : > { %p562_p3 = pnand %p560_p2, %p531_p11  ;;  %p568_p0 = scmp.lt.u32.totalorder %s559_s4, %s912_s27 }
  0x4b   : > { %p567_p5 = por %p566_p12, %p565_p10 }
  0x4c   : > { %p563_p4 = pneg %p562_p3 }
  0x4d   : > { %p569_p1 = por %p568_p0, %p567_p5 }
  0x4f   : > { %p570_p7 = pnand %p569_p1, %p563_p4 }
  0x51   : > { %573 = shalt.err (!%p570_p7)
}
  0x52   : > { %s574_s24 = scalar_lea.vmem %s183_s0, 128  ;;  %s718_s30 = smov [#allocation6]  }
  0x53   : > { %p575_p8 = scmp.ne.s32.totalorder %s183_s0, %s574_s24  ;;  %s579_s23 = sshll.u32 %s718_s30, 4  ;;  %s580_s23 = int_to_ptr.vmem [resolvable:$false] %s579_s23 }
  0x54   : > { %s581_s25 = scalar_lea.vmem %s580_s23, 256  ;;  %p582_p9 = scmp.lt.s32.totalorder %s183_s0, %s580_s23 }
  0x55   : > { %p577_p2 = pnand %p575_p8, %p531_p11  ;;  %p583_p13 = scmp.lt.s32.totalorder %s581_s25, %s574_s24 }
  0x57   : > { %p578_p3 = pneg %p577_p2  ;;  %p584_p10 = por %p583_p13, %p582_p9 }
  0x59   : > { %p585_p12 = pnand %p584_p10, %p578_p3 }
  0x5b   : > { %588 = shalt.err (!%p585_p12)
}
  0x5c   : > { %433 = dma.hbm_to_vmem [thread:$0]  (!%p865_p6), %s912_s27, 128, %s183_s0, %s168_s29  }
  0x5d   : > { %p1043_p4 = scmp.ne.s32.totalorder %s1040_s20, 0 }
  0x5e   : > { %s193_s4 = sand.u32 (!%p1043_p4), 1, %s691_s13   ;;  %p1044_p11 = scmp.ne.s32.totalorder (!%p1043_p4), %s1033_s3, 0 }
  0x5f   : > { %191 = sbr.rel (%p1043_p4) target bundleno = 173 (0xad), region = 28  ;;  %s405_s21 = sshll.u32 (!%p1043_p4), %s193_s4, 3 }
  0x60   : > { %s194_s22 = scalar_lea.sflag (!%p1043_p4), [#allocation4], %s193_s4  ;;  %s197_s28 = scalar_lea.vmem (!%p1043_p4), [#allocation3], %s405_s21 }
  0x66   : > { %662 = dma.done.wait (%p1044_p11), %s194_s22, 128  }
  0x67   : > { %664 = vsyncadd (%p1044_p11), %s194_s22, 4294967168  ;;  %s203_s26 = scalar_lea.sflag [#allocation7], %s193_s4  ;;  %s206_s24 = scalar_lea.vmem [#allocation6], %s405_s21 }
  0x68   : > { %666 = dma.done.wait (%p1044_p11), %s203_s26, 128  }
  0x69   : > { %668 = vsyncadd (%p1044_p11), %s203_s26, 4294967168  ;;  %s229_s0 = sand.u32 1, %s679_s10   ;;  %p407_p9 = scmp.ne.s32.totalorder %s699_s15, 0 }
  0x6a   : > { %s950_s6 = scalar_lea.vmem [#allocation8], %s229_s0  ;;  %v719_v0 = vmov (!%p407_p9), 0.0  }
  0x6b   : > { %242 = sbr.rel (%p407_p9) target bundleno = 114 (0x72), region = 40  ;;  %243 = vst [vmem:[#allocation2] sm:$0xff] (!%p407_p9), %v719_v0 }
  0x72 PF: > { %s408_s20 = sshll.u32 %s703_s16, 1  ;;  %v244_v1 = vld [vmem:[%s197_s28] sm:$0xff]  ;;  %v245_v2 = vld [vmem:[%s206_s24] sm:$0xff]  ;;  %v256_v3 = vlaneseq  ;;  %p415_p5 = scmp.ne.s32.totalorder %s699_s15, 1 }
  0x73   : > { %s249_s27 = sadd.s32 %s699_s15, %s408_s20  ;;  %v246_v4 = vsub.f32 %v244_v1, %v245_v2  ;;  %v261_v8 = vld [vmem:[#allocation2] sm:$0xff] }
  0x74   : > { %s409_s3 = sshll.u32 %s249_s27, 3  ;;  %v257_v5 = vshrl.u32 %v256_v3, 7 }
  0x75   : > { %s251_s29 = ssub.s32 23, %s409_s3  ;;  %v247_v6 = vmul.f32 %v246_v4, %v246_v4 }
  0x76   : > { %p252_p6 = scmp.gt.s32.totalorder %s251_s29, 0  ;;  %p410_p13 = scmp.lt.s32.totalorder %s251_s29, 8 }
  0x78   : > { %s1070_s29 = smov (!%p252_p6, %s251_s29), 0 }
  0x79   : > { %s1072_s29 = smov (!%p410_p13, %s1070_s29), 8  ;;  %268 = sbr.rel (%p415_p5) target bundleno = 148 (0x94), region = 44 }
  0x7a   : > { %v258_v7 = vstv %s1072_s29 }
  0x7b   : > { %vm259_vm0 = vcmp.lt.s32.totalorder %v257_v5, %v258_v7 }
  0x7c   : > { %v260_v9 = vsel %vm259_vm0, %v247_v6, 0.0 }
  0x7d   : > { %v263_v10 = vadd.f32 %v261_v8, %v260_v9 }
  0x7f   : > { %264 = vst [vmem:[#allocation2] sm:$0xff] %v263_v10 }
  0x86   : > { %v269_v11 = vld [vmem:[#allocation2] sm:$0xff] }
  0x87   : > { %v270_v12 = vrot.slane %v269_v11, 4 }
  0x89   : > { %v271_v13 = vadd.f32 %v270_v12, %v269_v11 }
  0x8b   : > { %v272_v14 = vrot.slane %v271_v13, 2 }
  0x8d   : > { %v273_v15 = vadd.f32 %v272_v14, %v271_v13 }
  0x8f   : > { %v274_v16 = vrot.slane %v273_v15, 1 }
  0x91   : > { %v275_v17 = vadd.f32 %v274_v16, %v273_v15 }
  0x93   : > { %276 = vst [vmem:[%s950_s6] sm:$0x1] %v275_v17 }
  0x94 PF: > { %s416_s30 = sshll.u32 %s703_s16, 4  ;;  %s290_s4 = sshll.u32 %s950_s6, 4  ;;  %s291_s4 = int_to_ptr.vmem [resolvable:$true] %s290_s4 }
  0x95   : > { %s961_s15 = scalar_lea.hbm %s1022_s2, %s416_s30  ;;  %s278_s21 = scalar_lea.sflag [#allocation5], %s229_s0 }
  0x96   : > { %s589_s22 = scalar_lea.vmem %s291_s4, 16  ;;  %p1045_p1 = scmp.ne.s32.totalorder %s1034_s8, 0 }
  0x97   : > { %p590_p0 = scmp.ne.s32.totalorder %s291_s4, %s589_s22  ;;  %s720_s28 = smov [#allocation8]  }
  0x98   : > { %s593_s26 = sshll.u32 %s720_s28, 4  ;;  %s594_s26 = int_to_ptr.vmem [resolvable:$false] %s593_s26 }
  0x99   : > { %p591_p7 = pnand %p590_p0, %p1045_p1  ;;  %s595_s24 = scalar_lea.vmem %s594_s26, 32 }
  0x9a   : > { %p596_p2 = scmp.lt.s32.totalorder %s291_s4, %s594_s26  ;;  %p597_p3 = scmp.lt.s32.totalorder %s595_s24, %s589_s22 }
  0x9b   : > { %p592_p8 = pneg %p591_p7 }
  0x9c   : > { %p598_p10 = por %p597_p3, %p596_p2 }
  0x9e   : > { %p599_p12 = pnand %p598_p10, %p592_p8 }
  0xa0   : > { %602 = shalt.err (!%p599_p12)
}
  0xa1   : > { %s603_s16 = scalar_lea.hbm %s961_s15, 16  ;;  %s607_s20 = scalar_lea.hbm %s1022_s2, 32 }
  0xa2   : > { %p604_p4 = scmp.ne.s32.totalorder %s961_s15, %s603_s16  ;;  %p608_p6 = scmp.lt.u32.totalorder %s961_s15, %s1022_s2 }
  0xa3   : > { %p609_p13 = scmp.lt.u32.totalorder %s607_s20, %s603_s16  ;;  %p611_p0 = scmp.lt.u32.totalorder %s603_s16, %s961_s15 }
  0xa4   : > { %p605_p11 = pnand %p604_p4, %p1045_p1 }
  0xa5   : > { %p610_p5 = por %p609_p13, %p608_p6 }
  0xa6   : > { %p606_p9 = pneg %p605_p11 }
  0xa7   : > { %p612_p7 = por %p611_p0, %p610_p5 }
  0xa9   : > { %p613_p8 = pnand %p612_p7, %p606_p9 }
  0xab   : > { %616 = shalt.err (!%p613_p8)
}
  0xac   : > { %425 = dma.vmem_to_hbm [thread:$0]  (%p1045_p1), %s291_s4, 16, %s961_s15, %s278_s21  }
  0xad PF: > { %p439_p2 = scmp.ge.s32.totalorder %s715_s19, 2  ;;  %s302_s29 = sand.u32 1, %s675_s9  }
  0xae   : > { %p1046_p3 = scmp.ne.s32.totalorder %s1035_s12, 0  ;;  %s303_s30 = scalar_lea.sflag [#allocation5], %s302_s29 }
  0xb0   : > { %p435_p10 = pnand %p439_p2, %p1046_p3 }
  0xb2   : > { %670 = dma.done.wait (!%p435_p10), %s303_s30, 16  }
  0xb3   : > { %672 = vsyncadd (!%p435_p10), %s303_s30, 4294967280  ;;  %s21_s19 = sadd.s32 1, %s715_s19   ;;  %s1047_s8 = sld [smem:[#allocation12_spill]] }
  0xb4   : > { %p18_p12 = scmp.ge.s32.totalorder %s21_s19, 6   ;;  %s1048_s23 = sld [smem:[#allocation13_spill]] }
  0xb5   : > { %s1049_s9 = smov %s679_s10  ;;  %s1050_s10 = smov %s683_s11 }
  0xb6   : > { %s1051_s11 = smov %s826_s5  ;;  %s1052_s12 = smov %s691_s13 }
  0xb7   : > { %s1053_s13 = smov %s695_s14  ;;  %s1054_s14 = smov %s838_s7 }
  0xb8   : > { %s1055_s15 = smov %s707_s17  ;;  %s1056_s16 = smov %s711_s18 }
  0xb9   : > { %s1057_s17 = smov %s1047_s8  ;;  %20 = sbr.rel (!%p18_p12) target bundleno = 13 (0xd), region = 94 }
  0xba   : > { %s1058_s18 = smov %s1048_s23 }
  0xc0   :  { %307 = vsyncpa [#allocation4], 1 }
  0xc1   :  { %309 = vsyncpa [#allocation4 + $0x1], 1 }
  0xc2   :  { %310 = vsyncpa [#allocation7], 1 }
  0xc3   :  { %312 = vsyncpa [#allocation7 + $0x1], 1 }
  0xc4   :  { %313 = vsyncpa [#allocation5], 1 }
  0xc5   :  { %315 = vsyncpa [#allocation5 + $0x1], 1 }

</bundles_post_ra>
